<compile_context>
chip_gen: v5e
topology: v5e:2x2
jax: 0.10.0
libtpu: 0.0.40
codegen_flags: <defaults>
</compile_context>

<pallas_src>
import functools

import jax
import jax.numpy as jnp
from jax.experimental import pallas as pl
from jax.experimental.pallas import tpu as pltpu

_LANE = 128
_TARGET_BLOCK_BYTES = 8 * 1024 * 1024   # per-block bytes; peak VMEM ~= 4x (2 in + 2 out bufs)
_VMEM_LIMIT_BYTES = 40 * 1024 * 1024    # 4x8 MiB + headroom; safe on v7x (64 MiB/TC)
_MIN_SPLIT_BYTES = 2 * 1024 * 1024      # arrays >= this always get >= 2 blocks (v7x megacore)


def _dsigmoid_kernel(x_ref, o_ref, *, compute_dtype):
    x = x_ref[...].astype(compute_dtype)
    # 0.1 * s * (1 - s) with s = sigmoid(0.1*x)  ==  0.025 * (1 - tanh(0.05*x)^2)
    t = jnp.tanh(0.05 * x)                     # EUP
    y = 0.025 * (1.0 - t * t)                  # VPU
    o_ref[...] = y.astype(o_ref.dtype)


def _is_pre_v6_chip() -> bool:
    """True for TPU generations without bf16-native VPU/EUP (v5e and older)."""
    try:
        kind = jax.devices()[0].device_kind.lower()
    except Exception:
        return False
    return any(tag in kind for tag in ("v2", "v3", "v4", "v5"))


def dsigmoid_out(x: jax.Array, *, donate_input: bool = False) -> jax.Array:
    """Applies 0.1 * sigmoid(0.1*x) * (1 - sigmoid(0.1*x)) elementwise."""
    orig_shape = x.shape
    dtype = x.dtype
    itemsize = jnp.dtype(dtype).itemsize
    if itemsize > 4:
        raise NotImplementedError("64-bit dtypes are not supported on TPU")

    flat = x.reshape(-1)
    n = flat.shape[0]
    if n == 0:
        return x

    # Native sublane packing: 8 for 32-bit, 16 for 16-bit, 32 for 8-bit dtypes.
    sub = {4: 8, 2: 16, 1: 32}[itemsize]
    base = sub * _LANE

    # Common case (typical NCHW activations): no padding, reshape is free metadata.
    pad = (-n) % base
    if pad:
        # TODO(synk): replace the pad/slice with a masked final block (scalar-prefetch n,
        # pltpu.store(..., mask=...)) to remove the extra HBM traffic entirely.
        flat = jnp.pad(flat, (0, pad))
    n_eff = n + pad

    # Lane-dense layout: widest C (multiple of 128, >= 1024) that divides n_eff.
    C = base
    for cand in (8192, 4096, 2048, 1024):
        if cand > base and n_eff % cand == 0:
            C = cand
            break
    rows = n_eff // C
    x2d = flat.reshape(rows, C)

    total_bytes = n_eff * itemsize

    # Row tile: ~_TARGET_BLOCK_BYTES per block, multiple of the sublane count.
    rows_per_block = max(sub, (_TARGET_BLOCK_BYTES // (C * itemsize)) // sub * sub)
    # Guarantee >= 2 grid blocks for anything big enough to matter, so the
    # "parallel" axis can be sharded across v7x's 2 TensorCores.
    if total_bytes >= _MIN_SPLIT_BYTES and rows >= 2 * sub:
        half_rows = pl.cdiv(pl.cdiv(rows, 2), sub) * sub
        rows_per_block = min(rows_per_block, half_rows)
    tile_rows = min(rows, rows_per_block)
    grid = (pl.cdiv(rows, tile_rows),)

    # Compute dtype: bf16-native math for bf16 inputs on v6e/v7x; f32 elsewhere
    # (v5e and older have no bf16 VPU/EUP) and for every other input dtype.
    if dtype == jnp.bfloat16 and not _is_pre_v6_chip():
        compute_dtype = jnp.bfloat16
    else:
        compute_dtype = jnp.float32

    cost = pl.CostEstimate(
        flops=4 * n_eff,
        transcendentals=n_eff,
        bytes_accessed=2 * n_eff * itemsize,
    )

    kernel = functools.partial(_dsigmoid_kernel, compute_dtype=compute_dtype)

    out2d = pl.pallas_call(
        kernel,
        out_shape=jax.ShapeDtypeStruct((rows, C), dtype),
        grid_spec=pltpu.PrefetchScalarGridSpec(
            num_scalar_prefetch=0,
            grid=grid,
            in_specs=[pl.BlockSpec((tile_rows, C), lambda i: (i, 0))],
            out_specs=pl.BlockSpec((tile_rows, C), lambda i: (i, 0)),
        ),
        compiler_params=pltpu.CompilerParams(
            dimension_semantics=("parallel",),
            vmem_limit_bytes=_VMEM_LIMIT_BYTES,
            # Let XLA fold the pad producer into the kernel's input DMA when we
            # had to pad; leave unset on the (common) aligned fast path.
            allow_input_fusion=[0] if pad else None,
        ),
        cost_estimate=cost,
        # PyTorch `_out` semantics: write in place over the (reshaped) input when
        # the caller can donate its buffer; off by default for safety.
        input_output_aliases={0: 0} if donate_input else {},
    )(x2d)

    out_flat = out2d.reshape(-1)
    if pad:
        out_flat = out_flat[:n]
    return out_flat.reshape(orig_shape)


if __name__ == "__main__":
    key = jax.random.PRNGKey(0)
    # Module is shape-agnostic elementwise; use a small NCHW-like input.
    x = jax.random.normal(key, (2, 4, 16, 16), dtype=jnp.float32)

    y = dsigmoid_out(x)
    jax.block_until_ready(y)

    # Reference check in plain JAX.
    s = jax.nn.sigmoid(0.1 * x)
    y_ref = 0.1 * s * (1.0 - s)
    assert y.shape == x.shape and y.dtype == x.dtype
    assert jnp.allclose(y, y_ref, atol=1e-6, rtol=1e-6)

    print("KERNEL_OK")
</pallas_src>

<mosaic_0001>
module attributes {stable_mosaic.version = 11 : i64} {
  func.func @_dsigmoid_kernel(%arg0: i32, %arg1: memref<1x2048xf32, #tpu.memory_space<vmem>>, %arg2: memref<1x2048xf32, #tpu.memory_space<vmem>>) attributes {dimension_semantics = [#tpu.dimension_semantics<parallel>], iteration_bounds = array<i64: 1>, scalar_prefetch = 0 : i64, scratch_operands = 0 : i64, tpu.core_type = #tpu.core_type<tc>, window_params = [{transform_indices = @transform_0, window_bounds = array<i64: 1, 2048>}, {transform_indices = @transform_1, window_bounds = array<i64: 1, 2048>}]} {
    %c0 = arith.constant 0 : index
    %c0_0 = arith.constant 0 : index
    %0 = vector.load %arg1[%c0, %c0_0] : memref<1x2048xf32, #tpu.memory_space<vmem>>, vector<1x2048xf32>
    %cst = arith.constant 5.000000e-02 : f32
    %1 = vector.broadcast %cst : f32 to vector<1x2048xf32>
    %2 = arith.mulf %1, %0 : vector<1x2048xf32>
    %3 = math.tanh %2 : vector<1x2048xf32>
    %4 = arith.mulf %3, %3 : vector<1x2048xf32>
    %cst_1 = arith.constant 1.000000e+00 : f32
    %5 = vector.broadcast %cst_1 : f32 to vector<1x2048xf32>
    %6 = arith.subf %5, %4 : vector<1x2048xf32>
    %cst_2 = arith.constant 2.500000e-02 : f32
    %7 = vector.broadcast %cst_2 : f32 to vector<1x2048xf32>
    %8 = arith.mulf %7, %6 : vector<1x2048xf32>
    %c0_3 = arith.constant 0 : index
    %c0_4 = arith.constant 0 : index
    %9 = vector.load %arg2[%c0_3, %c0_4] : memref<1x2048xf32, #tpu.memory_space<vmem>>, vector<1x2048xf32>
    tpu.vector_store %arg2[%c0_3, %c0_4], %8 {strides = array<i32>} : memref<1x2048xf32, #tpu.memory_space<vmem>>, vector<1x2048xf32>,
    return
  }
  func.func @transform_0(%arg0: i32) -> (i32, i32) {
    %c0_i32 = arith.constant 0 : i32
    %c0_i32_0 = arith.constant 0 : i32
    return %arg0, %c0_i32 : i32, i32
  }
  func.func @transform_1(%arg0: i32) -> (i32, i32) {
    %c0_i32 = arith.constant 0 : i32
    %c0_i32_0 = arith.constant 0 : i32
    return %arg0, %c0_i32 : i32, i32
  }
}

</mosaic_0001>

<bundles_post_ra>
// kernel: tpu_custom_call.1
= control target key start
LH: loop header
LB: loop body
LE: loop exit
PB: predicated region body
PF: predicated region fallthrough
CT: control target
= control target key end

     0   :  { %6 = vsyncpa [#allocation3], 0  ;;  %s130_s0 = inlined_call_operand.hbm [shape: f32[1,2048], index: 0, kind: input, shape index: {}]   ;;  %s131_s1 = inlined_call_operand.hbm [shape: f32[1,2048], index: 1, kind: output, shape index: {}]  }
   0x1   :  { %7 = vsyncpa [#allocation4], 0  ;;  %s13_s8 = sshll.u32 %s130_s0, 4  ;;  %s112_s9 = smov [#allocation2]   ;;  %s14_s8 = int_to_ptr.hbm [resolvable:$true] %s13_s8 }
   0x2   :  { %s15_s10 = sshll.u32 %s112_s9, 4  ;;  %s16_s10 = int_to_ptr.vmem [resolvable:$true] %s15_s10 }
   0x3   :  { %18 = dma.hbm_to_vmem [thread:$0]  %s14_s8, 256, %s16_s10, [#allocation3]  }
   0x4   :  { %108 = dma.done.wait [#allocation3], 256  }
   0x5   :  { %109 = vsyncadd [#allocation3], 4294967040  ;;  %v23_v0 = vld [vmem:[#allocation2] sm:$0xff]  ;;  %v24_v1 = vld [vmem:[#allocation2 + $0x8] sm:$0xff]  ;;  %s113_s11 = smov [#allocation5]   ;;  %s44_s14 = sshll.u32 %s131_s1, 4  ;;  %s45_s14 = int_to_ptr.hbm [resolvable:$true] %s44_s14 }
   0x6   :  { %v25_v2 = vmul.f32 0.05, %v23_v0  ;;  %v26_v3 = vmul.f32 0.05, %v24_v1  ;;  %s42_s0 = sshll.u32 %s113_s11, 4  ;;  %s43_s0 = int_to_ptr.vmem [resolvable:$true] %s42_s0 }
   0x8   :  { %56 = vtanh.f32 %v25_v2 }
   0x9   :  { %58 = vtanh.f32 %v26_v3 }
   0xe   :  { %v57_v4 = vpop.eup %56 }
   0xf   :  { %v59_v5 = vpop.eup %58  ;;  %v29_v6 = vmul.f32 %v57_v4, %v57_v4 }
  0x10   :  { %v30_v7 = vmul.f32 %v59_v5, %v59_v5 }
  0x11   :  { %v31_v8 = vsub.f32 1.0, %v29_v6 }
  0x12   :  { %v32_v9 = vsub.f32 1.0, %v30_v7 }
  0x13   :  { %v33_v10 = vmul.f32 0.025, %v31_v8 }
  0x14   :  { %v34_v11 = vmul.f32 0.025, %v32_v9 }
  0x15   :  { %35 = vst [vmem:[#allocation5] sm:$0xff] %v33_v10 }
  0x16   :  { %36 = vst [vmem:[#allocation5 + $0x8] sm:$0xff] %v34_v11 }
  0x17   :  { %47 = dma.vmem_to_hbm [thread:$0]  %s43_s0, 256, %s45_s14, [#allocation4]  }
  0x18   :  { %110 = dma.done.wait [#allocation4], 256  }
  0x19   :  { %111 = vsyncadd [#allocation4], 4294967040 }
  0x1a   :  { %52 = vsyncpa [#allocation3], 1 }
  0x1b   :  { %53 = vsyncpa [#allocation4], 1 }

</bundles_post_ra>
